<compile_context>
chip_gen: v7x
topology: tpu7x:2x2x1
jax: 0.10.0
libtpu: 0.0.40
codegen_flags: <defaults>
</compile_context>

<pallas_src>
import jax
import jax.numpy as jnp
from jax import lax
from jax.experimental import pallas as pl
from jax.experimental.pallas import tpu as pltpu

_LANE = 128


def _round_up(x, m):
    return ((x + m - 1) // m) * m


def _qfunc_kernel(obs_ref, act_ref, w1o_ref, w1a_ref, b1_ref,
                  w2_ref, b2_ref, w3t_ref, b3_ref, out_ref):
    # Layer 1 with fused concat: x @ W1 == obs @ W1[:obs_dim] + act @ W1[obs_dim:]
    h1 = (jnp.dot(obs_ref[...], w1o_ref[...], preferred_element_type=jnp.float32)
          + jnp.dot(act_ref[...], w1a_ref[...], preferred_element_type=jnp.float32)
          + b1_ref[...])
    h1 = jnp.maximum(h1, 0.0)                       # ReLU in f32 on the VPU

    # Layer 2
    h2 = jnp.dot(h1.astype(w2_ref.dtype), w2_ref[...],
                 preferred_element_type=jnp.float32) + b2_ref[...]
    h2 = jnp.maximum(h2, 0.0)

    # Layer 3, transposed (NT matmul): (1, H2) x (TB, H2) contracted over H2
    # -> (1, TB).  Lane-dense output tile, no masked (TB, 1) store, no
    # in-kernel transpose.
    q_t = lax.dot_general(
        w3t_ref[...], h2.astype(w3t_ref.dtype),
        dimension_numbers=(((1,), (1,)), ((), ())),
        preferred_element_type=jnp.float32)
    out_ref[...] = (q_t + b3_ref[...]).astype(out_ref.dtype)


def _select_tile(B, itemsize, block_b, vmem_budget_bytes):
    """Pick the batch tile (multiple of 128) from a VMEM budget and a user cap."""
    # Estimated VMEM bytes per batch row (narrow tiles lane-pad to 128 lanes):
    #   obs + act input tiles, double-buffered: 2 inputs * 2 bufs * 128 * itemsize
    #   h1 / h2 (+ slack) f32 temporaries:      3 * 128 * 4
    per_row = 4 * _LANE * itemsize + 3 * _LANE * 4
    tb_vmem = max(_LANE, (vmem_budget_bytes // per_row) // _LANE * _LANE)
    tb_cap = min(block_b, tb_vmem)

    b128 = _round_up(B, _LANE)
    if b128 <= tb_cap:
        if B >= 1024:
            # Whole batch fits one tile but is big: split into two tiles so the
            # "parallel" grid axis can feed both v7x TensorCores.
            tb = _round_up(-(-B // 2), _LANE)
        else:
            tb = b128
    else:
        tb = tb_cap
    return tb, per_row


def mlp_q_function(obs, act, params, *, block_b=8192,
                   vmem_budget_bytes=32 * 1024 * 1024):
    """Pallas forward of MLPQFunction. Returns shape (B,) like torch.squeeze(q, -1)."""
    w1, b1, w2, b2, w3, b3 = params
    B, obs_dim = obs.shape
    act_dim = act.shape[1]
    assert block_b % _LANE == 0, "block_b must be a multiple of 128"

    # Matmul-input dtype follows the producers (no host-side cast round-trip).
    mm_dtype = jnp.promote_types(obs.dtype, act.dtype)
    obs_c = obs.astype(mm_dtype)   # no-op in the common case
    act_c = act.astype(mm_dtype)

    # Fuse the concat: split W1 by input feature group (host-side, tiny).
    w1o_c = w1[:obs_dim].astype(mm_dtype)            # (obs_dim, H1)
    w1a_c = w1[obs_dim:].astype(mm_dtype)            # (act_dim, H1)
    w2_c = w2.astype(mm_dtype)                       # (H1, H2)
    # Explicit transpose (not reshape) so a wider head would still be correct.
    w3t_c = jnp.swapaxes(w3, 0, 1).astype(mm_dtype)  # (1, H2)
    b1_c, b2_c, b3_c = (b.astype(jnp.float32) for b in (b1, b2, b3))

    # Tile selection from VMEM budget (fits v7x 64 MiB/TC with headroom).
    tb, per_row = _select_tile(B, jnp.dtype(mm_dtype).itemsize,
                               block_b, vmem_budget_bytes)
    b_pad = _round_up(B, tb)
    if b_pad != B:  # ragged batch: zero-pad rows (sliced off before return)
        obs_c = jnp.pad(obs_c, ((0, b_pad - B), (0, 0)))
        act_c = jnp.pad(act_c, ((0, b_pad - B), (0, 0)))
    num_tiles = b_pad // tb

    # Raise the scoped VMEM limit so the bigger double-buffered tiles compile;
    # keep it under v7x's 64 MiB physical VMEM.
    est_bytes = per_row * tb + (2 << 20)   # + weights/biases/output, generous
    vmem_limit = int(min(max(est_bytes * 3 // 2, 16 << 20), 60 << 20))

    def const(shape):
        # Weights/biases: same block every grid step -> VMEM-resident.
        return pl.BlockSpec(shape, lambda i: (0, 0))

    out = pl.pallas_call(
        _qfunc_kernel,
        out_shape=jax.ShapeDtypeStruct((1, b_pad), jnp.float32),
        grid_spec=pltpu.PrefetchScalarGridSpec(
            num_scalar_prefetch=0,
            grid=(num_tiles,),
            in_specs=[
                pl.BlockSpec((tb, obs_dim), lambda i: (i, 0)),   # obs tile
                pl.BlockSpec((tb, act_dim), lambda i: (i, 0)),   # act tile
                const(w1o_c.shape),
                const(w1a_c.shape),
                const(b1_c.shape),
                const(w2_c.shape),
                const(b2_c.shape),
                const(w3t_c.shape),
                const(b3_c.shape),
            ],
            out_specs=pl.BlockSpec((1, tb), lambda i: (0, i)),   # lane-dense q^T
        ),
        compiler_params=pltpu.CompilerParams(
            dimension_semantics=("parallel",),
            vmem_limit_bytes=vmem_limit),
    )(obs_c, act_c, w1o_c, w1a_c, b1_c, w2_c, b2_c, w3t_c, b3_c)

    return out[0, :B]


def init_params(key, obs_dim, act_dim, hidden_sizes):
    """Deterministic init mimicking nn.Linear default (uniform +/- 1/sqrt(fan_in)).

    Weights stored as (in_features, out_features); biases as (1, out_features).
    """
    sizes = [obs_dim + act_dim] + list(hidden_sizes) + [1]
    params = []
    for d_in, d_out in zip(sizes[:-1], sizes[1:]):
        key, kw, kb = jax.random.split(key, 3)
        bound = 1.0 / jnp.sqrt(d_in)
        w = jax.random.uniform(kw, (d_in, d_out), jnp.float32, -bound, bound)
        b = jax.random.uniform(kb, (1, d_out), jnp.float32, -bound, bound)
        params += [w, b]
    return tuple(params)


def reference_forward(obs, act, params):
    """Pure-JAX reference of the PyTorch module (matmul dtype follows inputs)."""
    w1, b1, w2, b2, w3, b3 = params
    dt = jnp.promote_types(obs.dtype, act.dtype)
    x = jnp.concatenate([obs.astype(dt), act.astype(dt)], axis=-1)
    h1 = jnp.maximum(
        jnp.dot(x, w1.astype(dt), preferred_element_type=jnp.float32) + b1, 0.0)
    h2 = jnp.maximum(
        jnp.dot(h1.astype(dt), w2.astype(dt), preferred_element_type=jnp.float32) + b2, 0.0)
    q = jnp.dot(h2.astype(dt), w3.astype(dt), preferred_element_type=jnp.float32) + b3
    return jnp.squeeze(q, -1)


if __name__ == "__main__":
    key = jax.random.PRNGKey(0)
    obs_dim, act_dim = 12, 4
    hidden_sizes = (32, 32)

    k_par, k1, k2, k3, k4, k5, k6 = jax.random.split(key, 7)
    params = init_params(k_par, obs_dim, act_dim, hidden_sizes)

    # Case 1: small batch (f32); rounds up to one 128-row tile (lane-dense store).
    B = 8
    obs = jax.random.normal(k1, (B, obs_dim), jnp.float32)
    act = jax.random.normal(k2, (B, act_dim), jnp.float32)
    q = jax.block_until_ready(mlp_q_function(obs, act, params))
    q_ref = reference_forward(obs, act, params)
    assert q.shape == (B,), q.shape
    assert jnp.allclose(q, q_ref, atol=1e-4, rtol=1e-4), (q, q_ref)

    # Case 2: multi-tile batch exercising the grid (300 rows, user cap 128 -> 3 tiles).
    B2 = 300
    obs2 = jax.random.normal(k3, (B2, obs_dim), jnp.float32)
    act2 = jax.random.normal(k4, (B2, act_dim), jnp.float32)
    q2 = jax.block_until_ready(mlp_q_function(obs2, act2, params, block_b=128))
    q2_ref = reference_forward(obs2, act2, params)
    assert q2.shape == (B2,), q2.shape
    assert jnp.allclose(q2, q2_ref, atol=1e-4, rtol=1e-4), (q2, q2_ref)

    # Case 3: default tiling on a larger batch -> megacore split into 2 tiles.
    B3 = 2048
    obs3 = jax.random.normal(k5, (B3, obs_dim), jnp.float32)
    act3 = jax.random.normal(k6, (B3, act_dim), jnp.float32)
    q3 = jax.block_until_ready(mlp_q_function(obs3, act3, params))
    q3_ref = reference_forward(obs3, act3, params)
    assert q3.shape == (B3,), q3.shape
    assert jnp.allclose(q3, q3_ref, atol=1e-4, rtol=1e-4), (q3, q3_ref)

    # Case 4: bf16 inputs from the producer (no host cast inside the wrapper);
    # matmul inputs become bf16 on all generations, accumulation stays f32.
    obs4 = obs3.astype(jnp.bfloat16)
    act4 = act3.astype(jnp.bfloat16)
    q4 = jax.block_until_ready(mlp_q_function(obs4, act4, params))
    q4_ref = reference_forward(obs4, act4, params)
    assert q4.shape == (B3,), q4.shape
    assert jnp.allclose(q4, q4_ref, atol=5e-3, rtol=5e-3), (q4, q4_ref)

    print("KERNEL_OK")
</pallas_src>

<mosaic_0001>
module attributes {stable_mosaic.version = 11 : i64} {
  func.func @_qfunc_kernel(%arg0: i32, %arg1: memref<128x12xf32, #tpu.memory_space<vmem>>, %arg2: memref<128x4xf32, #tpu.memory_space<vmem>>, %arg3: memref<12x32xf32, #tpu.memory_space<vmem>>, %arg4: memref<4x32xf32, #tpu.memory_space<vmem>>, %arg5: memref<1x32xf32, #tpu.memory_space<vmem>>, %arg6: memref<32x32xf32, #tpu.memory_space<vmem>>, %arg7: memref<1x32xf32, #tpu.memory_space<vmem>>, %arg8: memref<1x32xf32, #tpu.memory_space<vmem>>, %arg9: memref<1x1xf32, #tpu.memory_space<vmem>>, %arg10: memref<1x128xf32, #tpu.memory_space<vmem>>) attributes {dimension_semantics = [#tpu.dimension_semantics<parallel>], iteration_bounds = array<i64: 1>, scalar_prefetch = 0 : i64, scratch_operands = 0 : i64, tpu.core_type = #tpu.core_type<tc>, window_params = [{transform_indices = @transform_0, window_bounds = array<i64: 128, 12>}, {transform_indices = @transform_1, window_bounds = array<i64: 128, 4>}, {pipeline_mode = #tpu.pipeline_mode<synchronous>, transform_indices = @transform_2, window_bounds = array<i64: 12, 32>}, {pipeline_mode = #tpu.pipeline_mode<synchronous>, transform_indices = @transform_3, window_bounds = array<i64: 4, 32>}, {pipeline_mode = #tpu.pipeline_mode<synchronous>, transform_indices = @transform_4, window_bounds = array<i64: 1, 32>}, {pipeline_mode = #tpu.pipeline_mode<synchronous>, transform_indices = @transform_5, window_bounds = array<i64: 32, 32>}, {pipeline_mode = #tpu.pipeline_mode<synchronous>, transform_indices = @transform_6, window_bounds = array<i64: 1, 32>}, {pipeline_mode = #tpu.pipeline_mode<synchronous>, transform_indices = @transform_7, window_bounds = array<i64: 1, 32>}, {pipeline_mode = #tpu.pipeline_mode<synchronous>, transform_indices = @transform_8, window_bounds = array<i64: 1, 1>}, {transform_indices = @transform_9, window_bounds = array<i64: 1, 128>}]} {
    %c0 = arith.constant 0 : index
    %c0_0 = arith.constant 0 : index
    %0 = vector.load %arg1[%c0, %c0_0] : memref<128x12xf32, #tpu.memory_space<vmem>>, vector<128x12xf32>
    %c0_1 = arith.constant 0 : index
    %c0_2 = arith.constant 0 : index
    %1 = vector.load %arg3[%c0_1, %c0_2] : memref<12x32xf32, #tpu.memory_space<vmem>>, vector<12x32xf32>
    %cst = arith.constant dense<0.000000e+00> : vector<128x32xf32>
    %2 = tpu.matmul %0, %1, %cst {dimension_numbers = #tpu.dot_dimension_numbers<[1], [0], [0], [1], [0, 0, 1, 1], [], []>} : vector<128x12xf32>, vector<12x32xf32>, vector<128x32xf32> -> vector<128x32xf32>
    %c0_3 = arith.constant 0 : index
    %c0_4 = arith.constant 0 : index
    %3 = vector.load %arg2[%c0_3, %c0_4] : memref<128x4xf32, #tpu.memory_space<vmem>>, vector<128x4xf32>
    %c0_5 = arith.constant 0 : index
    %c0_6 = arith.constant 0 : index
    %4 = vector.load %arg4[%c0_5, %c0_6] : memref<4x32xf32, #tpu.memory_space<vmem>>, vector<4x32xf32>
    %cst_7 = arith.constant dense<0.000000e+00> : vector<128x32xf32>
    %5 = tpu.matmul %3, %4, %cst_7 {dimension_numbers = #tpu.dot_dimension_numbers<[1], [0], [0], [1], [0, 0, 1, 1], [], []>} : vector<128x4xf32>, vector<4x32xf32>, vector<128x32xf32> -> vector<128x32xf32>
    %6 = arith.addf %2, %5 : vector<128x32xf32>
    %c0_8 = arith.constant 0 : index
    %c0_9 = arith.constant 0 : index
    %7 = vector.load %arg5[%c0_8, %c0_9] : memref<1x32xf32, #tpu.memory_space<vmem>>, vector<1x32xf32>
    %8 = vector.broadcast %7 : vector<1x32xf32> to vector<128x32xf32>
    %9 = arith.addf %6, %8 : vector<128x32xf32>
    %cst_10 = arith.constant 0.000000e+00 : f32
    %10 = vector.broadcast %cst_10 : f32 to vector<128x32xf32>
    %11 = arith.maximumf %9, %10 : vector<128x32xf32>
    %c0_11 = arith.constant 0 : index
    %c0_12 = arith.constant 0 : index
    %12 = vector.load %arg6[%c0_11, %c0_12] : memref<32x32xf32, #tpu.memory_space<vmem>>, vector<32x32xf32>
    %cst_13 = arith.constant dense<0.000000e+00> : vector<128x32xf32>
    %13 = tpu.matmul %11, %12, %cst_13 {dimension_numbers = #tpu.dot_dimension_numbers<[1], [0], [0], [1], [0, 0, 1, 1], [], []>} : vector<128x32xf32>, vector<32x32xf32>, vector<128x32xf32> -> vector<128x32xf32>
    %c0_14 = arith.constant 0 : index
    %c0_15 = arith.constant 0 : index
    %14 = vector.load %arg7[%c0_14, %c0_15] : memref<1x32xf32, #tpu.memory_space<vmem>>, vector<1x32xf32>
    %15 = vector.broadcast %14 : vector<1x32xf32> to vector<128x32xf32>
    %16 = arith.addf %13, %15 : vector<128x32xf32>
    %cst_16 = arith.constant 0.000000e+00 : f32
    %17 = vector.broadcast %cst_16 : f32 to vector<128x32xf32>
    %18 = arith.maximumf %16, %17 : vector<128x32xf32>
    %c0_17 = arith.constant 0 : index
    %c0_18 = arith.constant 0 : index
    %19 = vector.load %arg8[%c0_17, %c0_18] : memref<1x32xf32, #tpu.memory_space<vmem>>, vector<1x32xf32>
    %cst_19 = arith.constant dense<0.000000e+00> : vector<1x128xf32>
    %20 = tpu.matmul %19, %18, %cst_19 {dimension_numbers = #tpu.dot_dimension_numbers<[1], [1], [0], [0], [0, 0, 1, 0], [], []>} : vector<1x32xf32>, vector<128x32xf32>, vector<1x128xf32> -> vector<1x128xf32>
    %c0_20 = arith.constant 0 : index
    %c0_21 = arith.constant 0 : index
    %21 = vector.load %arg9[%c0_20, %c0_21] : memref<1x1xf32, #tpu.memory_space<vmem>>, vector<1x1xf32>
    %22 = vector.broadcast %21 : vector<1x1xf32> to vector<1x128xf32>
    %23 = arith.addf %20, %22 : vector<1x128xf32>
    %c0_22 = arith.constant 0 : index
    %c0_23 = arith.constant 0 : index
    %24 = vector.load %arg10[%c0_22, %c0_23] : memref<1x128xf32, #tpu.memory_space<vmem>>, vector<1x128xf32>
    tpu.vector_store %arg10[%c0_22, %c0_23], %23 {strides = array<i32>} : memref<1x128xf32, #tpu.memory_space<vmem>>, vector<1x128xf32>,
    return
  }
  func.func @transform_0(%arg0: i32) -> (i32, i32) {
    %c0_i32 = arith.constant 0 : i32
    %c0_i32_0 = arith.constant 0 : i32
    return %arg0, %c0_i32 : i32, i32
  }
  func.func @transform_1(%arg0: i32) -> (i32, i32) {
    %c0_i32 = arith.constant 0 : i32
    %c0_i32_0 = arith.constant 0 : i32
    return %arg0, %c0_i32 : i32, i32
  }
  func.func @transform_2(%arg0: i32) -> (i32, i32) {
    %c0_i32 = arith.constant 0 : i32
    %c0_i32_0 = arith.constant 0 : i32
    %c0_i32_1 = arith.constant 0 : i32
    return %c0_i32, %c0_i32_0 : i32, i32
  }
  func.func @transform_3(%arg0: i32) -> (i32, i32) {
    %c0_i32 = arith.constant 0 : i32
    %c0_i32_0 = arith.constant 0 : i32
    %c0_i32_1 = arith.constant 0 : i32
    return %c0_i32, %c0_i32_0 : i32, i32
  }
  func.func @transform_4(%arg0: i32) -> (i32, i32) {
    %c0_i32 = arith.constant 0 : i32
    %c0_i32_0 = arith.constant 0 : i32
    %c0_i32_1 = arith.constant 0 : i32
    return %c0_i32, %c0_i32_0 : i32, i32
  }
  func.func @transform_5(%arg0: i32) -> (i32, i32) {
    %c0_i32 = arith.constant 0 : i32
    %c0_i32_0 = arith.constant 0 : i32
    %c0_i32_1 = arith.constant 0 : i32
    return %c0_i32, %c0_i32_0 : i32, i32
  }
  func.func @transform_6(%arg0: i32) -> (i32, i32) {
    %c0_i32 = arith.constant 0 : i32
    %c0_i32_0 = arith.constant 0 : i32
    %c0_i32_1 = arith.constant 0 : i32
    return %c0_i32, %c0_i32_0 : i32, i32
  }
  func.func @transform_7(%arg0: i32) -> (i32, i32) {
    %c0_i32 = arith.constant 0 : i32
    %c0_i32_0 = arith.constant 0 : i32
    %c0_i32_1 = arith.constant 0 : i32
    return %c0_i32, %c0_i32_0 : i32, i32
  }
  func.func @transform_8(%arg0: i32) -> (i32, i32) {
    %c0_i32 = arith.constant 0 : i32
    %c0_i32_0 = arith.constant 0 : i32
    %c0_i32_1 = arith.constant 0 : i32
    return %c0_i32, %c0_i32_0 : i32, i32
  }
  func.func @transform_9(%arg0: i32) -> (i32, i32) {
    %c0_i32 = arith.constant 0 : i32
    %c0_i32_0 = arith.constant 0 : i32
    return %c0_i32, %arg0 : i32, i32
  }
}

</mosaic_0001>

<bundles_post_ra>
// kernel: tpu_custom_call.1
= control target key start
LH: loop header
LB: loop body
LE: loop exit
PB: predicated region body
PF: predicated region fallthrough
CT: control target
= control target key end

     0   :  { %s1503_s0 = inlined_call_operand.vmem [shape: f32[128,12], index: 0, kind: input, shape index: {}]   ;;  %s1504_s1 = inlined_call_operand.vmem [shape: f32[128,4], index: 1, kind: input, shape index: {}]   ;;  %s1505_s2 = inlined_call_operand.vmem [shape: f32[12,32], index: 2, kind: input, shape index: {}]   ;;  %s1506_s3 = inlined_call_operand.vmem [shape: f32[4,32], index: 3, kind: input, shape index: {}]   ;;  %s1507_s4 = inlined_call_operand.vmem [shape: f32[1,32], index: 4, kind: input, shape index: {}]   ;;  %s1508_s5 = inlined_call_operand.vmem [shape: f32[32,32], index: 5, kind: input, shape index: {}]   ;;  %s1509_s6 = inlined_call_operand.vmem [shape: f32[1,32], index: 6, kind: input, shape index: {}]   ;;  %s1510_s7 = inlined_call_operand.vmem [shape: f32[1,32], index: 7, kind: input, shape index: {}]   ;;  %s1511_s8 = inlined_call_operand.<no memory space> [shape: f32[1,1], index: 8, kind: input, shape index: {}]   ;;  %s1512_s9 = inlined_call_operand.hbm [shape: f32[1,128], index: 9, kind: output, shape index: {}]  }
   0x1   :  { %v14_v0 = vstv %s1511_s8 }
   0x2   :  { %15 = vst [vmem:[#allocation2] sm:$0x1] %v14_v0 }
   0x3   :  { %v69_v1 = vld [vmem:[%s1506_s3] sm:$0xf]  ;;  %vm119_vm0 = vcmask 1043456   ;;  %vm70_vm1 = vcmask 31744   ;;  %v54_v3 = vld [vmem:[%s1504_s1 + $0x8] sm:$0xff]  ;;  %v55_v6 = vld [vmem:[%s1504_s1 + $0x10] sm:$0xff] }
   0x4   :  { %v53_v2 = vld [vmem:[%s1504_s1] sm:$0xff]  ;;  %1013 = vmatprep.subr.msk.mxu0 %vm119_vm0, %v69_v1  ;;  %v52_v5 = vld [vmem:[%s1505_s2 + $0x8] sm:$0xf]  ;;  %vm1227_vm2 = vmmov 1   ;;  %v56_v8 = vld [vmem:[%s1504_s1 + $0x18] sm:$0xff] }
   0x5   :  { %1015 = vmatprep.mubr.msk.f32.mxu0 %vm70_vm1, %v53_v2  ;;  %v51_v4 = vld [vmem:[%s1505_s2] sm:$0xff]  ;;  %1014 = vmatpush3.msk.msra.mxu0 %vm119_vm0, %v69_v1  ;;  %vm1135_vm3 = vmpackc.low %vm119_vm0, %vm1227_vm2  ;;  %v58_v10 = vld [vmem:[%s1504_s1 + $0x28] sm:$0xff] }
   0x6   :  { %v1134_v7 = vpack.c.bf16 %v52_v5, %v51_v4  ;;  %1016 = vmatmul.mubr.msk.f32.vlgmr.msra.gmra.mrb[0].mxu0 %vm70_vm1, %v54_v3  ;;  %v57_v9 = vld [vmem:[%s1504_s1 + $0x20] sm:$0xff]  ;;  %v59_v11 = vld [vmem:[%s1504_s1 + $0x30] sm:$0xff]  ;;  %v60_v12 = vld [vmem:[%s1504_s1 + $0x38] sm:$0xff] }
   0x7   :  { %1018 = vmatprep.mubr.msk.f32.mxu0 %vm70_vm1, %v55_v6  ;;  %v504_v13 = vld [vmem:[%s1508_s5] sm:$0xff]  ;;  %v505_v14 = vld [vmem:[%s1508_s5 + $0x8] sm:$0xff] }
   0x8   :  { %1136 = vmatprep.subr.msk.bf16.mxu0 %vm1135_vm3, %v1134_v7 }
   0x9   :  { %1139 = vmatpush3.bf16.msk.msra.mxu0 %vm1135_vm3, %v1134_v7 }
   0xa   :  { %1019 = vmatmul.mubr.msk.f32.gmra.mrb[2].mxu0 %vm70_vm1, %v56_v8 }
   0xb   :  { %1021 = vmatprep.mubr.msk.f32.mxu0 %vm70_vm1, %v57_v9 }
   0xe   :  { %1022 = vmatmul.mubr.msk.f32.gmra.mrb[4].mxu0 %vm70_vm1, %v58_v10 }
   0xf   :  { %1024 = vmatprep.mubr.msk.f32.mxu0 %vm70_vm1, %v59_v11 }
  0x10   :  { %16 = vsyncpa [#allocation4], 0  ;;  %v61_v15 = vld [vmem:[%s1504_s1 + $0x40] sm:$0xff]  ;;  %v1140_v16 = vpack.c.bf16 %v505_v14, %v504_v13  ;;  %v62_v17 = vld [vmem:[%s1504_s1 + $0x48] sm:$0xff]  ;;  %vm268_vm4 = vcmask 97280   ;;  %vm515_vm5 = vcmask 261120  }
  0x11   :  { %v63_v18 = vld [vmem:[%s1504_s1 + $0x50] sm:$0xff]  ;;  %v64_v19 = vld [vmem:[%s1504_s1 + $0x58] sm:$0xff]  ;;  %v65_v20 = vld [vmem:[%s1504_s1 + $0x60] sm:$0xff]  ;;  %vm1229_vm6 = vmmov 0   ;;  %s1232_s17 = smov [#allocation3]  }
  0x12   :  { %1025 = vmatmul.mubr.msk.f32.gmra.mrb[6].mxu0 %vm70_vm1, %v60_v12  ;;  %1141 = vmatprep.subr.bf16.mxu1 %v1140_v16  ;;  %v66_v21 = vld [vmem:[%s1504_s1 + $0x68] sm:$0xff]  ;;  %v67_v22 = vld [vmem:[%s1504_s1 + $0x70] sm:$0xff]  ;;  %v68_v23 = vld [vmem:[%s1504_s1 + $0x78] sm:$0xff]  ;;  %s864_s8 = sshll.u32 %s1232_s17, 4  ;;  %s865_s8 = int_to_ptr.vmem [resolvable:$true] %s864_s8 }
  0x13   :  { %1027 = vmatprep.mubr.msk.f32.mxu0 %vm70_vm1, %v61_v15  ;;  %1143 = vmatpush3.bf16.msra.mxu1 %v1140_v16  ;;  %v35_v24 = vld [vmem:[%s1503_s0] sm:$0xff]  ;;  %v36_v25 = vld [vmem:[%s1503_s0 + $0x8] sm:$0xff]  ;;  %v37_v26 = vld [vmem:[%s1503_s0 + $0x10] sm:$0xff]  ;;  %s1203_s18 = scalar_lea.vmem %s865_s8, 16  ;;  %s1207_s19 = scalar_lea.vmem %s865_s8, 32 }
  0x14   :  { %v38_v27 = vld [vmem:[%s1503_s0 + $0x18] sm:$0xff]  ;;  %v39_v28 = vld [vmem:[%s1503_s0 + $0x20] sm:$0xff]  ;;  %v40_v29 = vld [vmem:[%s1503_s0 + $0x28] sm:$0xff]  ;;  %p1204_p0 = scmp.ne.s32.totalorder %s865_s8, %s1203_s18  ;;  %p1208_p1 = scmp.lt.s32.totalorder %s865_s8, %s865_s8 }
  0x15   :  { %v41_v30 = vld [vmem:[%s1503_s0 + $0x30] sm:$0xff]  ;;  %v42_v31 = vld [vmem:[%s1503_s0 + $0x38] sm:$0xff]  ;;  %v43_v32 = vld [vmem:[%s1503_s0 + $0x40] sm:$0xff]  ;;  %p1209_p2 = scmp.lt.s32.totalorder %s1207_s19, %s1203_s18 }
  0x16   :  { %1028 = vmatmul.mubr.msk.f32.gmra.mrb[8].mxu0 %vm70_vm1, %v62_v17  ;;  %v44_v33 = vld [vmem:[%s1503_s0 + $0x48] sm:$0xff]  ;;  %v45_v34 = vld [vmem:[%s1503_s0 + $0x50] sm:$0xff]  ;;  %v46_v35 = vld [vmem:[%s1503_s0 + $0x58] sm:$0xff] }
  0x17   :  { %1030 = vmatprep.mubr.msk.f32.mxu0 %vm70_vm1, %v63_v18  ;;  %v47_v36 = vld [vmem:[%s1503_s0 + $0x60] sm:$0xff]  ;;  %v48_v37 = vld [vmem:[%s1503_s0 + $0x68] sm:$0xff]  ;;  %v49_v38 = vld [vmem:[%s1503_s0 + $0x70] sm:$0xff]  ;;  %p1210_p3 = por %p1209_p2, %p1208_p1 }
  0x18   :  { %v50_v39 = vld [vmem:[%s1503_s0 + $0x78] sm:$0xff]  ;;  %v506_v40 = vld [vmem:[%s1508_s5 + $0x10] sm:$0xff]  ;;  %v906_v43 = vld [vmem:[%s1507_s4] ss:$0 sm:$0xff] }
  0x19   :  { %v507_v41 = vld [vmem:[%s1508_s5 + $0x18] sm:$0xff]  ;;  %vm1460_vm7 = vmpackc.low %vm515_vm5, %vm515_vm5  ;;  %p1211_p4 = pnand %p1210_p3, %p1204_p0 }
  0x1a   :  { %1031 = vmatmul.mubr.msk.f32.gmra.mrb[10].mxu0 %vm70_vm1, %v64_v19  ;;  %v1144_v42 = vpack.c.bf16 %v507_v41, %v506_v40 }
  0x1b   :  { %1033 = vmatprep.mubr.msk.f32.mxu0 %vm70_vm1, %v65_v20 }
  0x1c   :  { %1145 = vmatprep.subr.bf16.mxu1 %v1144_v42 }
  0x1d   :  { %1147 = vmatpush3.bf16.msra.mxu1 %v1144_v42 }
  0x1e   :  { %1034 = vmatmul.mubr.msk.f32.gmra.mrb[12].mxu0 %vm70_vm1, %v66_v21 }
  0x1f   :  { %1036 = vmatprep.mubr.msk.f32.mxu0 %vm70_vm1, %v67_v22 }
  0x22   :  { %1037 = vmatmul.mubr.msk.f32.gmra.mrb[14].mxu0 %vm70_vm1, %v68_v23 }
  0x23   :  { %1043 = vmatprep.mubr.msk.f32.mxu0 %vm268_vm4, %v35_v24 }
  0x26   :  { %1044 = vmatmul.mubr.msk.f32.vlgmr.msra.gmra.mrb[0].mxu0 %vm268_vm4, %v36_v25 }
  0x27   :  { %1046 = vmatprep.mubr.msk.f32.mxu0 %vm268_vm4, %v37_v26 }
  0x2a   :  { %1047 = vmatmul.mubr.msk.f32.gmra.mrb[2].mxu0 %vm268_vm4, %v38_v27 }
  0x2b   :  { %1049 = vmatprep.mubr.msk.f32.mxu0 %vm268_vm4, %v39_v28  ;;  %v1228_v28 = vmov 0.0|0.0  }
  0x2c   :  { %1148 = vmatprep.subr.bf16.mxu1 %v1228_v28 }
  0x2e   :  { %1050 = vmatmul.mubr.msk.f32.gmra.mrb[4].mxu0 %vm268_vm4, %v40_v29  ;;  %v1230_v29 = vmov 0.0  }
  0x2f   :  { %1052 = vmatprep.mubr.msk.f32.mxu0 %vm268_vm4, %v41_v30  ;;  %v726_v30 = vld [vmem:[#allocation2] sm:$0x1] }
  0x32   :  { %1053 = vmatmul.mubr.msk.f32.gmra.mrb[6].mxu0 %vm268_vm4, %v42_v31  ;;  %v1231_v31 = vmov 0  }
  0x33   :  { %1055 = vmatprep.mubr.msk.f32.mxu0 %vm268_vm4, %v43_v32  ;;  %1202 = vset.pattern.permute.xlu0 %v1231_v31  ;;  %v907_v32 = vld [vmem:[%s1509_s6] ss:$0 sm:$0xff] }
  0x34   :  { %729 = vperm.xlu0 %1202, %v726_v30  }
  0x36   :  { %1056 = vmatmul.mubr.msk.f32.gmra.mrb[8].mxu0 %vm268_vm4, %v44_v33 }
  0x37   :  { %1058 = vmatprep.mubr.msk.f32.mxu0 %vm268_vm4, %v45_v34 }
  0x3a   :  { %1059 = vmatmul.mubr.msk.f32.gmra.mrb[10].mxu0 %vm268_vm4, %v46_v35 }
  0x3b   :  { %1061 = vmatprep.mubr.msk.f32.mxu0 %vm268_vm4, %v47_v36 }
  0x3e   :  { %1062 = vmatmul.mubr.msk.f32.gmra.mrb[12].mxu0 %vm268_vm4, %v48_v37 }
  0x3f   :  { %1064 = vmatprep.mubr.msk.f32.mxu0 %vm268_vm4, %v49_v38 }
  0x42   :  { %1065 = vmatmul.mubr.msk.f32.gmra.mrb[14].mxu0 %vm268_vm4, %v50_v39 }
  0xb3   :  { %v730_v31 = vpop.permute.xlu0 %729 }
  0xf9   :  { %v1045_v44 = vpop.f32.mrb[0].mxu0 }
  0xfa   :  { %v473_v45 = vadd.f32 %v1045_v44, %v906_v43  ;;  %v386_v46 = vpop.f32.mrb[1].mxu0 }
  0xfb   :  { %v472_v47 = vadd.f32 %v906_v43, %v386_v46 }
  0xfc   :  { %v489_v50 = vmax.f32 %v473_v45, 0.0 }
  0xfd   :  { %v488_v48 = vmax.f32 %v472_v47, 0.0  ;;  %v1048_v49 = vpop.f32.mrb[2].mxu0 }
  0xfe   :  { %v475_v51 = vadd.f32 %v1048_v49, %v906_v43  ;;  %v396_v52 = vpop.f32.mrb[3].mxu0 }
  0xff   :  { %v474_v53 = vadd.f32 %v906_v43, %v396_v52  ;;  %1075 = vmatprep.mubr.msk.f32.mxu1 %vm515_vm5, %v488_v48 }
 0x100   :  { %1076 = vmatmul.mubr.msk.f32.vlgmr.msra.gmra.mrb[0].mxu1 %vm515_vm5, %v489_v50  ;;  %v491_v56 = vmax.f32 %v475_v51, 0.0 }
 0x101   :  { %v490_v54 = vmax.f32 %v474_v53, 0.0  ;;  %v1051_v55 = vpop.f32.mrb[4].mxu0 }
 0x102   :  { %v477_v57 = vadd.f32 %v1051_v55, %v906_v43  ;;  %v406_v58 = vpop.f32.mrb[5].mxu0 }
 0x103   :  { %v476_v59 = vadd.f32 %v906_v43, %v406_v58  ;;  %1078 = vmatprep.mubr.msk.f32.mxu1 %vm515_vm5, %v490_v54 }
 0x104   :  { %1079 = vmatmul.mubr.msk.f32.gmra.mrb[2].mxu1 %vm515_vm5, %v491_v56  ;;  %v493_v62 = vmax.f32 %v477_v57, 0.0 }
 0x105   :  { %v492_v60 = vmax.f32 %v476_v59, 0.0  ;;  %v1054_v61 = vpop.f32.mrb[6].mxu0 }
 0x106   :  { %v479_v63 = vadd.f32 %v1054_v61, %v906_v43  ;;  %v416_v0 = vpop.f32.mrb[7].mxu0 }
 0x107   :  { %v478_v1 = vadd.f32 %v906_v43, %v416_v0  ;;  %1081 = vmatprep.mubr.msk.f32.mxu1 %vm515_vm5, %v492_v60 }
 0x108   :  { %1082 = vmatmul.mubr.msk.f32.gmra.mrb[4].mxu1 %vm515_vm5, %v493_v62  ;;  %v495_v4 = vmax.f32 %v479_v63, 0.0 }
 0x109   :  { %v494_v2 = vmax.f32 %v478_v1, 0.0  ;;  %v1057_v3 = vpop.f32.mrb[8].mxu0 }
 0x10a   :  { %v481_v5 = vadd.f32 %v1057_v3, %v906_v43  ;;  %v426_v6 = vpop.f32.mrb[9].mxu0 }
 0x10b   :  { %v480_v7 = vadd.f32 %v906_v43, %v426_v6  ;;  %1084 = vmatprep.mubr.msk.f32.mxu1 %vm515_vm5, %v494_v2 }
 0x10c   :  { %1085 = vmatmul.mubr.msk.f32.gmra.mrb[6].mxu1 %vm515_vm5, %v495_v4  ;;  %v497_v10 = vmax.f32 %v481_v5, 0.0 }
 0x10d   :  { %v496_v8 = vmax.f32 %v480_v7, 0.0  ;;  %v1060_v9 = vpop.f32.mrb[10].mxu0 }
 0x10e   :  { %v483_v11 = vadd.f32 %v1060_v9, %v906_v43  ;;  %v436_v12 = vpop.f32.mrb[11].mxu0 }
 0x10f   :  { %v482_v13 = vadd.f32 %v906_v43, %v436_v12  ;;  %1087 = vmatprep.mubr.msk.f32.mxu1 %vm515_vm5, %v496_v8 }
 0x110   :  { %1088 = vmatmul.mubr.msk.f32.gmra.mrb[8].mxu1 %vm515_vm5, %v497_v10  ;;  %v499_v16 = vmax.f32 %v483_v11, 0.0 }
 0x111   :  { %v498_v14 = vmax.f32 %v482_v13, 0.0  ;;  %v1063_v15 = vpop.f32.mrb[12].mxu0 }
 0x112   :  { %v485_v17 = vadd.f32 %v1063_v15, %v906_v43  ;;  %v446_v18 = vpop.f32.mrb[13].mxu0 }
 0x113   :  { %v484_v19 = vadd.f32 %v906_v43, %v446_v18  ;;  %1090 = vmatprep.mubr.msk.f32.mxu1 %vm515_vm5, %v498_v14 }
 0x114   :  { %1091 = vmatmul.mubr.msk.f32.gmra.mrb[10].mxu1 %vm515_vm5, %v499_v16  ;;  %v501_v22 = vmax.f32 %v485_v17, 0.0 }
 0x115   :  { %v500_v20 = vmax.f32 %v484_v19, 0.0  ;;  %v1066_v21 = vpop.f32.mrb[14].mxu0 }
 0x116   :  { %v487_v23 = vadd.f32 %v1066_v21, %v906_v43  ;;  %v456_v24 = vpop.f32.mrb[15].mxu0 }
 0x117   :  { %v486_v25 = vadd.f32 %v906_v43, %v456_v24  ;;  %1093 = vmatprep.mubr.msk.f32.mxu1 %vm515_vm5, %v500_v20 }
 0x118   :  { %1094 = vmatmul.mubr.msk.f32.gmra.mrb[12].mxu1 %vm515_vm5, %v501_v22  ;;  %v503_v27 = vmax.f32 %v487_v23, 0.0 }
 0x119   :  { %v502_v26 = vmax.f32 %v486_v25, 0.0 }
 0x11b   :  { %1096 = vmatprep.mubr.msk.f32.mxu1 %vm515_vm5, %v502_v26  ;;  %v725_v26 = vld [vmem:[%s1510_s7] sm:$0x1] }
 0x11c   :  { %1097 = vmatmul.mubr.msk.f32.gmra.mrb[14].mxu1 %vm515_vm5, %v503_v27  ;;  %v732_v27 = vlaneseq }
 0x11d   :  { %1131 = vmatprep.mubr.msk.f32.mxu1 %vm1229_vm6, %v1230_v29 }
 0x11e   :  { %v733_v29 = vshrl.u32 %v732_v27, 7 }
 0x120   :  { %v734_v30 = vsub.s32 0, %v733_v29 }
 0x1d3   :  { %v1077_v33 = vpop.f32.mrb[0].mxu1 }
 0x1d4   :  { %v636_v34 = vadd.f32 %v1077_v33, %v907_v32  ;;  %v630_v35 = vpop.f32.mrb[1].mxu1 }
 0x1d5   :  { %v631_v36 = vadd.f32 %v907_v32, %v630_v35 }
 0x1d6   :  { %v710_v37 = vmax.f32 %v636_v34, 0.0 }
 0x1d7   :  { %v709_v38 = vmax.f32 %v631_v36, 0.0  ;;  %v1080_v39 = vpop.f32.mrb[2].mxu1 }
 0x1d8   :  { %v646_v40 = vadd.f32 %v1080_v39, %v907_v32  ;;  %v640_v41 = vpop.f32.mrb[3].mxu1 }
 0x1d9   :  { %v1149_v43 = vpack.c.bf16 %v710_v37, %v709_v38  ;;  %v641_v44 = vadd.f32 %v907_v32, %v640_v41 }
 0x1da   :  { %v712_v45 = vmax.f32 %v646_v40, 0.0 }
 0x1db   :  { %v711_v46 = vmax.f32 %v641_v44, 0.0  ;;  %v1083_v47 = vpop.f32.mrb[4].mxu1  ;;  %1151 = vmatpush3.bf16.xpose.msk.msra.mxu1 %vm1460_vm7, %v1149_v43 }
 0x1dc   :  { %v656_v48 = vadd.f32 %v1083_v47, %v907_v32  ;;  %v650_v49 = vpop.f32.mrb[5].mxu1  ;;  %1152 = vmatprep.subr.bf16.mxu1 %v1228_v28 }
 0x1dd   :  { %v1153_v50 = vpack.c.bf16 %v712_v45, %v711_v46  ;;  %v651_v51 = vadd.f32 %v907_v32, %v650_v49 }
 0x1de   :  { %v714_v52 = vmax.f32 %v656_v48, 0.0 }
 0x1df   :  { %v713_v53 = vmax.f32 %v651_v51, 0.0  ;;  %v1086_v54 = vpop.f32.mrb[6].mxu1 }
 0x1e0   :  { %v666_v55 = vadd.f32 %v1086_v54, %v907_v32  ;;  %v660_v56 = vpop.f32.mrb[7].mxu1 }
 0x1e1   :  { %v1157_v57 = vpack.c.bf16 %v714_v52, %v713_v53  ;;  %v661_v58 = vadd.f32 %v907_v32, %v660_v56 }
 0x1e2   :  { %v716_v59 = vmax.f32 %v666_v55, 0.0 }
 0x1e3   :  { %v715_v60 = vmax.f32 %v661_v58, 0.0  ;;  %v1089_v61 = vpop.f32.mrb[8].mxu1  ;;  %1155 = vmatpush3.bf16.xpose.msk.msra.mxu1 %vm1460_vm7, %v1153_v50 }
 0x1e4   :  { %v676_v62 = vadd.f32 %v1089_v61, %v907_v32  ;;  %v670_v63 = vpop.f32.mrb[9].mxu1  ;;  %1156 = vmatprep.subr.bf16.mxu1 %v1228_v28 }
 0x1e5   :  { %v1161_v0 = vpack.c.bf16 %v716_v59, %v715_v60  ;;  %v671_v1 = vadd.f32 %v907_v32, %v670_v63 }
 0x1e6   :  { %v718_v2 = vmax.f32 %v676_v62, 0.0 }
 0x1e7   :  { %v717_v3 = vmax.f32 %v671_v1, 0.0  ;;  %v1092_v4 = vpop.f32.mrb[10].mxu1 }
 0x1e8   :  { %v686_v5 = vadd.f32 %v1092_v4, %v907_v32  ;;  %v680_v6 = vpop.f32.mrb[11].mxu1 }
 0x1e9   :  { %v1165_v7 = vpack.c.bf16 %v718_v2, %v717_v3  ;;  %v681_v8 = vadd.f32 %v907_v32, %v680_v6 }
 0x1ea   :  { %v720_v9 = vmax.f32 %v686_v5, 0.0 }
 0x1eb   :  { %v719_v10 = vmax.f32 %v681_v8, 0.0  ;;  %v1095_v11 = vpop.f32.mrb[12].mxu1  ;;  %1159 = vmatpush3.bf16.xpose.msk.msra.mxu1 %vm1460_vm7, %v1157_v57 }
 0x1ec   :  { %v696_v12 = vadd.f32 %v1095_v11, %v907_v32  ;;  %v690_v13 = vpop.f32.mrb[13].mxu1  ;;  %1160 = vmatprep.subr.bf16.mxu1 %v1228_v28 }
 0x1ed   :  { %v1169_v14 = vpack.c.bf16 %v720_v9, %v719_v10  ;;  %v691_v15 = vadd.f32 %v907_v32, %v690_v13 }
 0x1ee   :  { %v722_v16 = vmax.f32 %v696_v12, 0.0 }
 0x1ef   :  { %v721_v17 = vmax.f32 %v691_v15, 0.0  ;;  %v1098_v18 = vpop.f32.mrb[14].mxu1 }
 0x1f0   :  { %v706_v19 = vadd.f32 %v1098_v18, %v907_v32  ;;  %v700_v20 = vpop.f32.mrb[15].mxu1 }
 0x1f1   :  { %v1173_v21 = vpack.c.bf16 %v722_v16, %v721_v17  ;;  %v701_v22 = vadd.f32 %v907_v32, %v700_v20  ;;  %v735_v32 = vrot.slane %v730_v31, %v734_v30 }
 0x1f2   :  { %v724_v23 = vmax.f32 %v706_v19, 0.0 }
 0x1f3   :  { %v723_v24 = vmax.f32 %v701_v22, 0.0  ;;  %1163 = vmatpush3.bf16.xpose.msk.msra.mxu1 %vm1460_vm7, %v1161_v0 }
 0x1f4   :  { %1164 = vmatprep.subr.bf16.mxu1 %v1228_v28 }
 0x1f5   :  { %v1177_v25 = vpack.c.bf16 %v724_v23, %v723_v24 }
 0x1fb   :  { %1167 = vmatpush3.bf16.xpose.msk.msra.mxu1 %vm1460_vm7, %v1165_v7 }
 0x1fc   :  { %1168 = vmatprep.subr.bf16.mxu1 %v1228_v28 }
 0x203   :  { %1171 = vmatpush3.bf16.xpose.msk.msra.mxu1 %vm1460_vm7, %v1169_v14 }
 0x204   :  { %1172 = vmatprep.subr.bf16.mxu1 %v1228_v28 }
 0x20b   :  { %1175 = vmatpush3.bf16.xpose.msk.msra.mxu1 %vm1460_vm7, %v1173_v21 }
 0x20c   :  { %1176 = vmatprep.subr.bf16.mxu1 %v1228_v28 }
 0x213   :  { %1179 = vmatpush3.bf16.xpose.msk.msra.mxu1 %vm1460_vm7, %v1177_v25 }
 0x21a   :  { %1132 = vmatmul.mubr.msk.f32.vlgmr.msra.gmra.mrb[16].mxu1 %vm515_vm5, %v725_v26 }
 0x2ed   :  { %v853_v33 = vpop.f32.mrb[16].mxu1 }
 0x2ee   :  { %v854_v34 = vadd.f32 %v853_v33, %v735_v32  ;;  %v1133_v35 = vpop.f32.mrb[17].mxu1 }
 0x2f0   :  { %857 = vst [vmem:[#allocation3] sm:$0x1] %v854_v34 }
 0x2f1   :  { %1214 = shalt.err (!%p1211_p4)
}
 0x2f2   :  { %s1215_s20 = scalar_lea.hbm %s1512_s9, 16 }
 0x2f3   :  { %p1216_p5 = scmp.ne.s32.totalorder %s1512_s9, %s1215_s20  ;;  %p1219_p6 = scmp.lt.u32.totalorder %s1215_s20, %s1512_s9 }
 0x2f5   :  { %p1221_p7 = pnand %p1219_p6, %p1216_p5 }
 0x2f7   :  { %1224 = shalt.err (!%p1221_p7)
}
 0x2f8   :  { %867 = dma.vmem_to_hbm [thread:$0]  %s865_s8, 16, %s1512_s9, [#allocation4]  }
 0x2f9   :  { %1225 = dma.done.wait [#allocation4], 16  }
 0x2fa   :  { %1226 = vsyncadd [#allocation4], 4294967280 }
 0x2fb   :  { %871 = vsyncpa [#allocation4], 1 }

</bundles_post_ra>
